<compile_context>
chip_gen: v5e
topology: v5e:2x2
jax: 0.10.0
libtpu: 0.0.40
codegen_flags: <defaults>
</compile_context>

<pallas_src>
import functools

import jax
import jax.numpy as jnp
from jax.experimental import pallas as pl
from jax.experimental.pallas import tpu as pltpu


_VMEM_LIMIT_BYTES = 48 * 1024 * 1024   # explicit, < v7x's 64 MiB physical VMEM
_INPUT_BUF_BYTES = 16 * 1024 * 1024    # per pipeline buffer (x2 double-buffered)


def _round_up(x: int, m: int) -> int:
    return ((x + m - 1) // m) * m


def _choose_tiles(B: int, N: int, tb, tn):
    """Pick (tb, tn). tb = batch tile (block carries 2*tb flat rows)."""
    b_pad = _round_up(B, 8)
    if tb is None:
        # Aim for >=2 blocks along the "parallel" B axis (v7x dual-TC),
        # capped at 256 batches (512 flat rows) per block.
        tb = min(256, _round_up(pl.cdiv(B, 2), 8), b_pad)
    else:
        tb = max(8, min(_round_up(tb, 8), b_pad))

    n_pad = _round_up(N, 128)
    if tn is None:
        # Prefer a single reduction pass (tn == padded N -> one contiguous
        # DMA, no accumulator round-trips); otherwise the largest
        # 128-multiple keeping one (2*tb, tn) f32 buffer within budget.
        row_bytes = 2 * tb * 4
        tn_cap = max(128, (_INPUT_BUF_BYTES // row_bytes) // 128 * 128)
        tn = min(n_pad, tn_cap)
    else:
        tn = max(128, min(_round_up(tn, 128), n_pad))
    return tb, tn


def _budgeted_ei_argfac_kernel(params_ref, x_ref, out_ref, max_acc, sum_acc,
                               *, n_total, tn):
    # params_ref (SMEM, shape (5,)):
    #   [0] mean_obj, [1] std_obj, [2] mean_cost, [3] std_cost,
    #   [4] budget_plus_cumulative_cost
    k = pl.program_id(1)
    nk = pl.num_programs(1)

    @pl.when(k == 0)
    def _init():
        max_acc[...] = jnp.full_like(max_acc, -jnp.inf)
        sum_acc[...] = jnp.zeros_like(sum_acc)

    mean_cost = params_ref[2]
    std_cost = params_ref[3]

    x = x_ref[...]                 # (2*TB, TN); even rows = obj, odd = log-cost

    def _accumulate(xv, expo):
        # Full-width reductions over the dense block; the objective/cost
        # de-interleave only touches the tiny (2*TB, 1) columns at finalize.
        max_acc[...] = jnp.maximum(max_acc[...],
                                   jnp.max(xv, axis=-1, keepdims=True))
        sum_acc[...] = sum_acc[...] + jnp.sum(jnp.exp(expo), axis=-1,
                                              keepdims=True)

    if n_total % tn == 0:
        # Every tile is full: no masking code emitted at all.
        _accumulate(x, std_cost * x + mean_cost)
    else:
        @pl.when(k < nk - 1)
        def _interior():           # unmasked interior tiles
            _accumulate(x, std_cost * x + mean_cost)

        @pl.when(k == nk - 1)
        def _tail():               # masked ragged last tile only
            lane = jax.lax.broadcasted_iota(jnp.int32, x.shape, 1)
            valid = (k * tn + lane) < n_total
            _accumulate(jnp.where(valid, x, -jnp.inf),
                        jnp.where(valid, std_cost * x + mean_cost, -jnp.inf))

    @pl.when(k == nk - 1)
    def _finalize():
        mean_obj = params_ref[0]
        std_obj = params_ref[1]    # > 0 (Standardize) => max/affine hoist valid
        bpc = params_ref[4]
        row = jax.lax.broadcasted_iota(jnp.int32, max_acc.shape, 0)
        is_obj = (row & 1) == 0    # even rows: objective; odd rows: log-cost
        out_ref[...] = jnp.where(is_obj,
                                 std_obj * max_acc[...] + mean_obj,
                                 bpc - sum_acc[...])


def budgeted_ei_argfac_forward(train_targets, means, stdvs,
                               budget_plus_cumulative_cost,
                               *, tb=None, tn=None):
    """Pallas forward for budgeted_ei_argfac.

    train_targets: (B, 2, N) float32 standardized targets
                   (output 0 = objective, output 1 = log-cost)
    means, stdvs:  (1, 2) float32 Standardize outcome-transform params
                   (stdvs strictly positive, as Standardize guarantees)
    budget_plus_cumulative_cost: python float or scalar array

    Returns {'best_f': (B, 1), 'budget': (B, 1)} float32.
    """
    train_targets = jnp.asarray(train_targets, jnp.float32)
    B, num_outputs, N = train_targets.shape
    assert num_outputs == 2, "expected exactly (objective, log-cost) outputs"

    means = jnp.asarray(means, jnp.float32).reshape(-1)
    stdvs = jnp.asarray(stdvs, jnp.float32).reshape(-1)

    tb, tn = _choose_tiles(B, N, tb, tn)
    grid = (pl.cdiv(B, tb), pl.cdiv(N, tn))

    # Zero-copy row-major flatten: row 2b = standardized objective of batch b,
    # row 2b+1 = standardized log-cost of batch b.
    flat = train_targets.reshape(2 * B, N)

    params = jnp.stack([
        means[0],   # mean_obj
        stdvs[0],   # std_obj (> 0 per Standardize; max/affine hoist relies on it)
        means[1],   # mean_cost (kept inside the exponent for exact parity)
        stdvs[1],   # std_cost
        jnp.asarray(budget_plus_cumulative_cost, jnp.float32),
    ])

    kernel = functools.partial(_budgeted_ei_argfac_kernel, n_total=N, tn=tn)

    cost = pl.CostEstimate(
        flops=8 * B * N,
        transcendentals=2 * B * N,
        bytes_accessed=2 * B * N * 4 + 2 * B * 4 + 5 * 4,
    )

    out_flat = pl.pallas_call(
        kernel,
        out_shape=jax.ShapeDtypeStruct((2 * B, 1), jnp.float32),
        grid=grid,
        in_specs=[
            pl.BlockSpec(memory_space=pltpu.MemorySpace.SMEM),   # params
            # Dense 2-D block; one rectangular (contiguous when tn == N) DMA
            # per step.  If a strided tn < N reduction ever leaves the DMA
            # exposed, pipeline_mode=pl.Buffered(3) here is cheap insurance.
            pl.BlockSpec((2 * tb, tn), lambda b, k: (b, k)),
        ],
        out_specs=pl.BlockSpec((2 * tb, 1), lambda b, k: (b, 0)),
        scratch_shapes=[
            pltpu.VMEM((2 * tb, 1), jnp.float32),   # running max (raw scale)
            pltpu.VMEM((2 * tb, 1), jnp.float32),   # running sum of exp(std_c*x+mean_c)
        ],
        compiler_params=pltpu.CompilerParams(
            dimension_semantics=("parallel", "arbitrary"),
            vmem_limit_bytes=_VMEM_LIMIT_BYTES,
        ),
        cost_estimate=cost,
    )(params, flat)

    # Tiny epilogue: zero-copy reshape + two column slices split the
    # interleaved (2B, 1) column into best_f / budget.
    pair = out_flat.reshape(B, 2)
    return {"best_f": pair[:, 0:1], "budget": pair[:, 1:2]}


def _reference(train_targets, means, stdvs, bpc):
    # Pure-JAX reference mirroring the PyTorch module exactly.
    y = jnp.swapaxes(train_targets, -2, -1)               # (B, N, 2)
    y_orig = y * stdvs + means                             # Standardize.untransform
    obj_vals = y_orig[..., 0]
    log_costs = y_orig[..., 1]
    costs = jnp.exp(log_costs)
    best_f = jnp.max(obj_vals, axis=-1, keepdims=True)
    budget = bpc - jnp.sum(costs, axis=-1, keepdims=True)
    return {"best_f": best_f, "budget": budget}


if __name__ == "__main__":
    key = jax.random.PRNGKey(0)
    k1, k2, k3, k4 = jax.random.split(key, 4)

    bpc = 10.0

    # Deterministic synthetic "model" state: standardized train targets and
    # Standardize outcome-transform parameters (stdvs strictly positive).
    B, N = 12, 300            # ragged vs. both the (8, .) and (., 128) tiles
    train_targets = jax.random.normal(k1, (B, 2, N), dtype=jnp.float32)
    means = jax.random.normal(k2, (1, 2), dtype=jnp.float32)
    stdvs = jax.nn.softplus(jax.random.normal(k3, (1, 2), dtype=jnp.float32)) + 0.1

    ref = _reference(train_targets, means, stdvs, bpc)

    # Case 1: small tiles -> multi-step reduction, accumulator init/finalize,
    # masked ragged-N tail, 2 parallel B blocks.
    out = jax.block_until_ready(
        budgeted_ei_argfac_forward(train_targets, means, stdvs, bpc, tb=8, tn=128))
    assert out["best_f"].shape == (B, 1) and out["budget"].shape == (B, 1)
    assert jnp.allclose(out["best_f"], ref["best_f"], atol=1e-4, rtol=1e-4)
    assert jnp.allclose(out["budget"], ref["budget"], atol=1e-4, rtol=1e-4)

    # Case 2: auto (production) tiles -> single-pass tn == padded N.
    out2 = jax.block_until_ready(
        budgeted_ei_argfac_forward(train_targets, means, stdvs, bpc))
    assert jnp.allclose(out2["best_f"], ref["best_f"], atol=1e-4, rtol=1e-4)
    assert jnp.allclose(out2["budget"], ref["budget"], atol=1e-4, rtol=1e-4)

    # Case 3: N multiple of tn -> fully unmasked fast path, ragged B tile.
    B3, N3 = 5, 256
    tt3 = jax.random.normal(k4, (B3, 2, N3), dtype=jnp.float32)
    ref3 = _reference(tt3, means, stdvs, bpc)
    out3 = jax.block_until_ready(
        budgeted_ei_argfac_forward(tt3, means, stdvs, bpc, tb=8, tn=128))
    assert out3["best_f"].shape == (B3, 1) and out3["budget"].shape == (B3, 1)
    assert jnp.allclose(out3["best_f"], ref3["best_f"], atol=1e-4, rtol=1e-4)
    assert jnp.allclose(out3["budget"], ref3["budget"], atol=1e-4, rtol=1e-4)

    print("KERNEL_OK")
</pallas_src>

<mosaic_0001>
module attributes {stable_mosaic.version = 11 : i64} {
  func.func @_budgeted_ei_argfac_kernel(%arg0: i32, %arg1: i32, %arg2: memref<5xf32, #tpu.memory_space<smem>>, %arg3: memref<16x128xf32, #tpu.memory_space<vmem>>, %arg4: memref<16x1xf32, #tpu.memory_space<vmem>>, %arg5: memref<16x1xf32, #tpu.memory_space<vmem>>, %arg6: memref<16x1xf32, #tpu.memory_space<vmem>>) attributes {dimension_semantics = [#tpu.dimension_semantics<parallel>, #tpu.dimension_semantics<arbitrary>], iteration_bounds = array<i64: 2, 3>, scalar_prefetch = 0 : i64, scratch_operands = 2 : i64, tpu.core_type = #tpu.core_type<tc>, window_params = [{transform_indices = @transform_0, window_bounds = array<i64: 5>}, {transform_indices = @transform_1, window_bounds = array<i64: 16, 128>}, {transform_indices = @transform_2, window_bounds = array<i64: 16, 1>}]} {
    %c0_i32 = arith.constant 0 : i32
    %0 = arith.cmpi eq, %arg1, %c0_i32 : i32
    %1 = arith.extui %0 : i1 to i32
    %c0_i32_0 = arith.constant 0 : i32
    %2 = arith.cmpi ne, %1, %c0_i32_0 : i32
    scf.if %2 {
      %cst = arith.constant 0xFF800000 : f32
      %15 = vector.broadcast %cst : f32 to vector<16x1xf32>
      %c0_7 = arith.constant 0 : index
      %c0_8 = arith.constant 0 : index
      %16 = vector.load %arg5[%c0_7, %c0_8] : memref<16x1xf32, #tpu.memory_space<vmem>>, vector<16x1xf32>
      tpu.vector_store %arg5[%c0_7, %c0_8], %15 {strides = array<i32>} : memref<16x1xf32, #tpu.memory_space<vmem>>, vector<16x1xf32>,
      %cst_9 = arith.constant 0.000000e+00 : f32
      %17 = vector.broadcast %cst_9 : f32 to vector<16x1xf32>
      %c0_10 = arith.constant 0 : index
      %c0_11 = arith.constant 0 : index
      %18 = vector.load %arg6[%c0_10, %c0_11] : memref<16x1xf32, #tpu.memory_space<vmem>>, vector<16x1xf32>
      tpu.vector_store %arg6[%c0_10, %c0_11], %17 {strides = array<i32>} : memref<16x1xf32, #tpu.memory_space<vmem>>, vector<16x1xf32>,
    } else {
    }
    %c2 = arith.constant 2 : index
    %3 = memref.load %arg2[%c2] : memref<5xf32, #tpu.memory_space<smem>>
    %c3 = arith.constant 3 : index
    %4 = memref.load %arg2[%c3] : memref<5xf32, #tpu.memory_space<smem>>
    %c0 = arith.constant 0 : index
    %c0_1 = arith.constant 0 : index
    %5 = vector.load %arg3[%c0, %c0_1] : memref<16x128xf32, #tpu.memory_space<vmem>>, vector<16x128xf32>
    %c2_i32 = arith.constant 2 : i32
    %6 = arith.cmpi slt, %arg1, %c2_i32 : i32
    %7 = arith.extui %6 : i1 to i32
    %c0_i32_2 = arith.constant 0 : i32
    %8 = arith.cmpi ne, %7, %c0_i32_2 : i32
    scf.if %8 {
      %15 = vector.broadcast %4 : f32 to vector<16x128xf32>
      %16 = arith.mulf %15, %5 : vector<16x128xf32>
      %17 = vector.broadcast %3 : f32 to vector<16x128xf32>
      %18 = arith.addf %16, %17 : vector<16x128xf32>
      %c0_7 = arith.constant 0 : index
      %c0_8 = arith.constant 0 : index
      %19 = vector.load %arg5[%c0_7, %c0_8] : memref<16x1xf32, #tpu.memory_space<vmem>>, vector<16x1xf32>
      %cst = arith.constant dense<0xFF800000> : vector<16xf32>
      %20 = vector.multi_reduction <maximumf>, %5, %cst [1] : vector<16x128xf32> to vector<16xf32>
      %21 = vector.shape_cast %20 : vector<16xf32> to vector<16x1xf32>
      %22 = arith.maximumf %19, %21 : vector<16x1xf32>
      %c0_9 = arith.constant 0 : index
      %c0_10 = arith.constant 0 : index
      %23 = vector.load %arg5[%c0_9, %c0_10] : memref<16x1xf32, #tpu.memory_space<vmem>>, vector<16x1xf32>
      tpu.vector_store %arg5[%c0_9, %c0_10], %22 {strides = array<i32>} : memref<16x1xf32, #tpu.memory_space<vmem>>, vector<16x1xf32>,
      %c0_11 = arith.constant 0 : index
      %c0_12 = arith.constant 0 : index
      %24 = vector.load %arg6[%c0_11, %c0_12] : memref<16x1xf32, #tpu.memory_space<vmem>>, vector<16x1xf32>
      %25 = math.exp %18 : vector<16x128xf32>
      %cst_13 = arith.constant dense<0.000000e+00> : vector<16xf32>
      %26 = vector.multi_reduction <add>, %25, %cst_13 [1] : vector<16x128xf32> to vector<16xf32>
      %27 = vector.shape_cast %26 : vector<16xf32> to vector<16x1xf32>
      %28 = arith.addf %24, %27 : vector<16x1xf32>
      %c0_14 = arith.constant 0 : index
      %c0_15 = arith.constant 0 : index
      %29 = vector.load %arg6[%c0_14, %c0_15] : memref<16x1xf32, #tpu.memory_space<vmem>>, vector<16x1xf32>
      tpu.vector_store %arg6[%c0_14, %c0_15], %28 {strides = array<i32>} : memref<16x1xf32, #tpu.memory_space<vmem>>, vector<16x1xf32>,
    } else {
    }
    %c2_i32_3 = arith.constant 2 : i32
    %9 = arith.cmpi eq, %arg1, %c2_i32_3 : i32
    %10 = arith.extui %9 : i1 to i32
    %c0_i32_4 = arith.constant 0 : i32
    %11 = arith.cmpi ne, %10, %c0_i32_4 : i32
    scf.if %11 {
      %15 = tpu.iota {dimensions = array<i32: 1>} : vector<16x128xi32>
      %c128_i32 = arith.constant 128 : i32
      %16 = arith.muli %arg1, %c128_i32 : i32
      %17 = vector.broadcast %16 : i32 to vector<16x128xi32>
      %18 = arith.addi %17, %15 : vector<16x128xi32>
      %c300_i32 = arith.constant 300 : i32
      %19 = vector.broadcast %c300_i32 : i32 to vector<16x128xi32>
      %20 = arith.cmpi slt, %18, %19 : vector<16x128xi32>
      %cst = arith.constant 0xFF800000 : f32
      %21 = vector.broadcast %cst : f32 to vector<16x128xf32>
      %22 = arith.select %20, %5, %21 : vector<16x128xi1>, vector<16x128xf32>
      %23 = vector.broadcast %4 : f32 to vector<16x128xf32>
      %24 = arith.mulf %23, %5 : vector<16x128xf32>
      %25 = vector.broadcast %3 : f32 to vector<16x128xf32>
      %26 = arith.addf %24, %25 : vector<16x128xf32>
      %cst_7 = arith.constant 0xFF800000 : f32
      %27 = vector.broadcast %cst_7 : f32 to vector<16x128xf32>
      %28 = arith.select %20, %26, %27 : vector<16x128xi1>, vector<16x128xf32>
      %c0_8 = arith.constant 0 : index
      %c0_9 = arith.constant 0 : index
      %29 = vector.load %arg5[%c0_8, %c0_9] : memref<16x1xf32, #tpu.memory_space<vmem>>, vector<16x1xf32>
      %cst_10 = arith.constant dense<0xFF800000> : vector<16xf32>
      %30 = vector.multi_reduction <maximumf>, %22, %cst_10 [1] : vector<16x128xf32> to vector<16xf32>
      %31 = vector.shape_cast %30 : vector<16xf32> to vector<16x1xf32>
      %32 = arith.maximumf %29, %31 : vector<16x1xf32>
      %c0_11 = arith.constant 0 : index
      %c0_12 = arith.constant 0 : index
      %33 = vector.load %arg5[%c0_11, %c0_12] : memref<16x1xf32, #tpu.memory_space<vmem>>, vector<16x1xf32>
      tpu.vector_store %arg5[%c0_11, %c0_12], %32 {strides = array<i32>} : memref<16x1xf32, #tpu.memory_space<vmem>>, vector<16x1xf32>,
      %c0_13 = arith.constant 0 : index
      %c0_14 = arith.constant 0 : index
      %34 = vector.load %arg6[%c0_13, %c0_14] : memref<16x1xf32, #tpu.memory_space<vmem>>, vector<16x1xf32>
      %35 = math.exp %28 : vector<16x128xf32>
      %cst_15 = arith.constant dense<0.000000e+00> : vector<16xf32>
      %36 = vector.multi_reduction <add>, %35, %cst_15 [1] : vector<16x128xf32> to vector<16xf32>
      %37 = vector.shape_cast %36 : vector<16xf32> to vector<16x1xf32>
      %38 = arith.addf %34, %37 : vector<16x1xf32>
      %c0_16 = arith.constant 0 : index
      %c0_17 = arith.constant 0 : index
      %39 = vector.load %arg6[%c0_16, %c0_17] : memref<16x1xf32, #tpu.memory_space<vmem>>, vector<16x1xf32>
      tpu.vector_store %arg6[%c0_16, %c0_17], %38 {strides = array<i32>} : memref<16x1xf32, #tpu.memory_space<vmem>>, vector<16x1xf32>,
    } else {
    }
    %c2_i32_5 = arith.constant 2 : i32
    %12 = arith.cmpi eq, %arg1, %c2_i32_5 : i32
    %13 = arith.extui %12 : i1 to i32
    %c0_i32_6 = arith.constant 0 : i32
    %14 = arith.cmpi ne, %13, %c0_i32_6 : i32
    scf.if %14 {
      %c0_7 = arith.constant 0 : index
      %15 = memref.load %arg2[%c0_7] : memref<5xf32, #tpu.memory_space<smem>>
      %c1 = arith.constant 1 : index
      %16 = memref.load %arg2[%c1] : memref<5xf32, #tpu.memory_space<smem>>
      %c4 = arith.constant 4 : index
      %17 = memref.load %arg2[%c4] : memref<5xf32, #tpu.memory_space<smem>>
      %18 = tpu.iota {dimensions = array<i32: 0>} : vector<16x1xi32>
      %c1_i32 = arith.constant 1 : i32
      %19 = vector.broadcast %c1_i32 : i32 to vector<16x1xi32>
      %20 = arith.andi %18, %19 : vector<16x1xi32>
      %c0_i32_8 = arith.constant 0 : i32
      %21 = vector.broadcast %c0_i32_8 : i32 to vector<16x1xi32>
      %22 = arith.cmpi eq, %20, %21 : vector<16x1xi32>
      %c0_9 = arith.constant 0 : index
      %c0_10 = arith.constant 0 : index
      %23 = vector.load %arg5[%c0_9, %c0_10] : memref<16x1xf32, #tpu.memory_space<vmem>>, vector<16x1xf32>
      %24 = vector.broadcast %16 : f32 to vector<16x1xf32>
      %25 = arith.mulf %24, %23 : vector<16x1xf32>
      %26 = vector.broadcast %15 : f32 to vector<16x1xf32>
      %27 = arith.addf %25, %26 : vector<16x1xf32>
      %c0_11 = arith.constant 0 : index
      %c0_12 = arith.constant 0 : index
      %28 = vector.load %arg6[%c0_11, %c0_12] : memref<16x1xf32, #tpu.memory_space<vmem>>, vector<16x1xf32>
      %29 = vector.broadcast %17 : f32 to vector<16x1xf32>
      %30 = arith.subf %29, %28 : vector<16x1xf32>
      %31 = arith.select %22, %27, %30 : vector<16x1xi1>, vector<16x1xf32>
      %c0_13 = arith.constant 0 : index
      %c0_14 = arith.constant 0 : index
      %32 = vector.load %arg4[%c0_13, %c0_14] : memref<16x1xf32, #tpu.memory_space<vmem>>, vector<16x1xf32>
      tpu.vector_store %arg4[%c0_13, %c0_14], %31 {strides = array<i32>} : memref<16x1xf32, #tpu.memory_space<vmem>>, vector<16x1xf32>,
    } else {
    }
    return
  }
  func.func @transform_0(%arg0: i32, %arg1: i32) -> i32 {
    %c0_i32 = arith.constant 0 : i32
    %c0_i32_0 = arith.constant 0 : i32
    return %c0_i32 : i32
  }
  func.func @transform_1(%arg0: i32, %arg1: i32) -> (i32, i32) {
    %c0_i32 = arith.constant 0 : i32
    return %arg0, %arg1 : i32, i32
  }
  func.func @transform_2(%arg0: i32, %arg1: i32) -> (i32, i32) {
    %c0_i32 = arith.constant 0 : i32
    %c0_i32_0 = arith.constant 0 : i32
    return %arg0, %c0_i32 : i32, i32
  }
}

</mosaic_0001>

<bundles_post_ra>
// kernel: tpu_custom_call.1
= control target key start
LH: loop header
LB: loop body
LE: loop exit
PB: predicated region body
PF: predicated region fallthrough
CT: control target
= control target key end

     0   :  { %s1275_s0 = inlined_call_operand.hbm [shape: f32[5], index: 0, kind: input, shape index: {}]   ;;  %s1276_s1 = inlined_call_operand.hbm [shape: f32[24,300], index: 1, kind: input, shape index: {}]   ;;  %s1277_s2 = inlined_call_operand.vmem [shape: f32[24,1], index: 2, kind: output, shape index: {}]  }
   0x1   :  { %1281 = sst [smem:[#allocation15_spill]] %s1275_s0 }
   0x2   :  { %7 = vsyncpa [#allocation6], 0 }
   0x3   :  { %8 = vsyncpa [#allocation5], 0 }
   0x4   :  { %10 = vsyncpa [#allocation5 + $0x1], 0  ;;  %s1026_s9 = smov 0   ;;  %s1028_s10 = smov 0  }
   0x5   :  { %s1030_s11 = smov 0   ;;  %s1032_s12 = smov 0  }
   0x6   :  { %s1034_s13 = smov 0   ;;  %s1036_s14 = smov 0  }
   0x7   :  { %s1038_s15 = smov 0   ;;  %s1040_s16 = smov 0  }
   0x8   :  { %s1042_s17 = smov 0   ;;  %s1044_s18 = smov 0  }
   0x9 LB: > { %1282 = sst [smem:[#allocation11_spill]] %s966_s17  ;;  %s583_s19 = sadd.s32 4294967295, %s970_s18   ;;  %s970_s18 = sphi %s1044_s18, %s16_s18   ;;  %s966_s17 = sphi %s1042_s17, %s1296_s17   ;;  %s962_s16 = sphi %s1040_s16, %s1303_s16   ;;  %s958_s15 = sphi %s1038_s15, %s1294_s15   ;;  %s954_s14 = sphi %s1036_s14, %s1302_s14   ;;  %s950_s13 = sphi %s1034_s13, %s1301_s13   ;;  %s946_s12 = sphi %s1032_s12, %s1300_s12   ;;  %s942_s11 = sphi %s1030_s11, %s1299_s11   ;;  %s938_s10 = sphi %s1028_s10, %s1298_s10   ;;  %s934_s9 = sphi %s1026_s9, %s1297_s9  }
   0xa   : > { %s25_s20 = sadd.s32 1, %s962_s16  ;;  %s28_s21 = sadd.s32 1, %s966_s17 }
   0xb   : > { %p26_p0 = scmp.ge.s32.totalorder %s25_s20, 3  ;;  %s58_s22 = sadd.s32 1, %s950_s13 }
   0xc   : > { %p65_p1 = scmp.ne.s32.totalorder %s950_s13, %s946_s12  ;;  %p66_p2 = scmp.eq.s32.totalorder %s970_s18, 0 }
   0xd   : > { %s1305_s20 = smov (%p26_p0, %s25_s20), 0  ;;  %s1307_s21 = smov (!%p26_p0, %s28_s21), %s966_s17 }
   0xe   : > { %1283 = sst [smem:[#allocation12_spill]] %s1305_s20  ;;  %s54_s23 = ssub.s32 %s962_s16, %s1305_s20 }
   0xf   : > { %p30_p3 = scmp.ge.s32.totalorder %s1307_s21, 2  ;;  %p71_p4 = scmp.ne.s32.totalorder %s946_s12, %s942_s11 }
  0x10   : > { %p1087_p5 = por %p66_p2, %p65_p1  ;;  %p1091_p6 = scmp.eq.s32.totalorder %s583_s19, 0 }
  0x11   : > { %s1309_s21 = smov (%p30_p3, %s1307_s21), 0  ;;  %s84_s27 = sadd.s32 1, %s938_s10 }
  0x12   : > { %1286 = sst [smem:[#allocation13_spill]] %s1309_s21  ;;  %p1099_p7 = por %p1091_p6, %p71_p4 }
  0x13   : > { %s53_s28 = ssub.s32 %s966_s17, %s1309_s21  ;;  %p94_p8 = scmp.ne.s32.totalorder %s938_s10, %s934_s9 }
  0x14   : > { %s55_s29 = sor.u32 %s54_s23, %s53_s28  ;;  %p82_p9 = scmp.eq.s32.totalorder %s53_s28, 0 }
  0x15   : > { %p56_p10 = scmp.eq.s32.totalorder %s55_s29, 0  ;;  %p95_p11 = scmp.eq.s32.totalorder %s583_s19, 5 }
  0x16   : > { %s1109_s30 = scalar_select %p82_p9, %s938_s10, %s84_s27  }
  0x17   : > { %s1112_s3 = scalar_select %p56_p10, %s950_s13, %s58_s22  }
  0x18   : > { %p1114_p12 = por %p95_p11, %p94_p8  ;;  %p585_p13 = scmp.ge.s32.totalorder %s970_s18, 1 }
  0x19   : > { %1288 = sst [smem:[#allocation14_spill]] %s1112_s3  ;;  %p108_p0 = scmp.lt.s32.totalorder %s970_s18, 7 }
  0x1a   : > { %s1291_s0 = sld [smem:[#allocation15_spill]]  ;;  %s1004_s11 = smov [#allocation4]  }
  0x1b   : > { %p1120_p1 = pnand %p585_p13, %p108_p0  ;;  %p587_p4 = scmp.ge.s32.totalorder %s970_s18, 6 }
  0x1d   : > { %p634_p2 = pneg %p1120_p1  ;;  %127 = sbr.rel (%p587_p4) target bundleno = 74 (0x4a), region = 20 }
  0x1f   : > { %p635_p3 = pnand %p634_p2, %p1091_p6 }
  0x20   : > { %s120_s8 = sshll.u32 %s1291_s0, 4  ;;  %s121_s8 = int_to_ptr.hbm [resolvable:$true] %s120_s8 }
  0x21   : > { %637 = dma.hbm_to_smem (!%p635_p3), %s121_s8, 16, %s1004_s11, [#allocation6]  }
  0x22   : > { %130 = sbr.rel (!%p1087_p5) target bundleno = 74 (0x4a), region = 24  ;;  %s131_s19 = sand.u32 (%p1087_p5), 1, %s950_s13  }
  0x23   : > { %s589_s22 = sshll.u32 (%p1087_p5), %s966_s17, 1  ;;  %s588_s23 = sshll.u32 (%p1087_p5), %s131_s19, 4 }
  0x24   : > { %s137_s27 = ssub.s32 (%p1087_p5), 3, %s589_s22  ;;  %s1139_s7 = scalar_lea.sflag (%p1087_p5), [#allocation5], %s131_s19 }
  0x25   : > { %p138_p8 = scmp.lt.s32.totalorder (%p1087_p5), %s137_s27, 2  ;;  %s135_s8 = scalar_lea.vmem (%p1087_p5), [#allocation7], %s588_s23 }
  0x27   : > { %s1311_s27 = smov (!%p138_p8, %s137_s27), 2 }
  0x28   : > { %s590_s28 = sshll.u32 %s1311_s27, 3 }
  0x29   : > { %s141_s29 = ssub.s32 16, %s590_s28 }
  0x2a   : > { %s142_s6 = sshll.u32 %s141_s29, 4 }
  0x2b   : > { %143 = vsyncadd %s1139_s7, %s142_s6  ;;  %p1142_p5 = scmp.ne.s32.totalorder %s590_s28, 0  ;;  %s628_s11 = smul.u32 6, %s966_s17 }
  0x2c   : > { %s1147_s22 = sshll.u32 %s135_s8, 4  ;;  %s595_s0 = sshll.u32 %s1311_s27, 7  ;;  %s153_s22 = int_to_ptr.vmem [resolvable:$true] %s1147_s22 }
  0x2d   : > { %s146_s29 = sadd.s32 %s962_s16, %s628_s11  ;;  %s815_s3 = sshrl.u32 %s595_s0, 4 }
  0x2e   : > { %s593_s19 = sshll.u32 %s146_s29, 3  ;;  %s824_s29 = scalar_lea.hbm %s1276_s1, 72 }
  0x2f   : > { %s148_s6 = scalar_lea.hbm %s1276_s1, %s593_s19 }
  0x30   : > { %s150_s20 = sshll.u32 %s148_s6, 4  ;;  %s1155_s20 = int_to_ptr.hbm [resolvable:$true] %s150_s20 }
  0x31   : > { %s813_s28 = sshra.s32 %s1155_s20, 4  ;;  %s814_s28 = int_to_ptr.hbm [resolvable:$true] %s813_s28 }
  0x32   : > { %s820_s17 = scalar_lea.hbm %s814_s28, %s815_s3 }
  0x33   : > { %p821_p9 = scmp.ne.s32.totalorder %s814_s28, %s820_s17  ;;  %p826_p13 = scmp.lt.s32.totalorder %s824_s29, %s820_s17 }
  0x35   : > { %p822_p10 = pnand %p821_p9, %p1142_p5 }
  0x37   : > { %p823_p11 = pneg %p822_p10 }
  0x39   : > { %p828_p0 = pnand %p826_p13, %p823_p11 }
  0x3b   : > { %831 = shalt.err (!%p828_p0)
}
  0x3c   : > { %s832_s21 = sshra.s32 %s153_s22, 4  ;;  %s1005_s23 = smov [#allocation7]   ;;  %s833_s21 = int_to_ptr.vmem [resolvable:$true] %s832_s21 }
  0x3d   : > { %s839_s19 = scalar_lea.vmem %s833_s21, %s815_s3  ;;  %s843_s6 = scalar_lea.vmem %s1005_s23, 32 }
  0x3e   : > { %p840_p2 = scmp.ne.s32.totalorder %s833_s21, %s839_s19  ;;  %p845_p8 = scmp.lt.s32.totalorder %s843_s6, %s839_s19 }
  0x40   : > { %p841_p3 = pnand %p840_p2, %p1142_p5 }
  0x42   : > { %p842_p4 = pneg %p841_p3 }
  0x44   : > { %p847_p9 = pnand %p845_p8, %p842_p4 }
  0x46   : > { %850 = shalt.err (!%p847_p9)
}
  0x47   : > { %s1006_s28 = smov 384   ;;  %s1007_s17 = smov 128  }
  0x48   : > { %s1008_s8 = smov 8  }
  0x49   : > { %158 = dma.hbm_to_vmem [thread:$0]  (%p1142_p5), %s1155_s20, %s595_s0, %s153_s22, %s1139_s7, %s1006_s28, %s1007_s17, %s1008_s8  }
  0x4a PF: > { %164 = sbr.rel (%p1120_p1) target bundleno = 452 (0x1c4), region = 28 }
  0x4f   : > { %925 = dma.done.wait (%p1091_p6), [#allocation6], 16  }
  0x50   : > { %927 = vsyncadd (%p1091_p6), [#allocation6], 4294967280  ;;  %s171_s3 = sand.u32 1, %s946_s12  }
  0x51   : > { %s598_s11 = sshll.u32 %s171_s3, 4  ;;  %s172_s29 = scalar_lea.sflag [#allocation5], %s171_s3 }
  0x52   : > { %s175_s24 = scalar_lea.vmem [#allocation7], %s598_s11 }
  0x53   : > { %929 = dma.done.wait (%p1099_p7), %s172_s29, 256  }
  0x54   : > { %931 = vsyncadd (%p1099_p7), %s172_s29, 4294967040 }
  0x55   : > { %181 = sfence }
  0x56   : > { %s194_s0 = sand.u32 1, %s934_s9   ;;  %p600_p1 = scmp.ne.s32.totalorder %s954_s14, 0 }
  0x57   : > { %s599_s20 = sshll.u32 %s194_s0, 4 }
  0x58   : > { %s1189_s5 = scalar_lea.vmem [#allocation8], %s599_s20   ;;  %210 = sbr.rel (%p600_p1) target bundleno = 98 (0x62), region = 40 }
  0x5d   : > { %vm211_vm0 = vcmask 7168   ;;  %v1009_v0 = vmov -inf   ;;  %v1010_v1 = vmov 0.0  }
  0x5e   : > { %212 = vst.msk [vmem:[#allocation2] sm:$0xff] %vm211_vm0, %v1009_v0 }
  0x5f   : > { %213 = vst.msk [vmem:[#allocation2 + $0x8] sm:$0xff] %vm211_vm0, %v1009_v0 }
  0x60   : > { %214 = vst.msk [vmem:[#allocation3] sm:$0xff] %vm211_vm0, %v1010_v1 }
  0x61   : > { %215 = vst.msk [vmem:[#allocation3 + $0x8] sm:$0xff] %vm211_vm0, %v1010_v1 }
  0x62 PF: > { %s1192_s25 = sld [smem:[#allocation4 + $0x2]]  ;;  %v218_v2 = vld [vmem:[%s175_s24] sm:$0xff]  ;;  %v219_v3 = vld [vmem:[%s175_s24 + $0x8] sm:$0xff]  ;;  %p603_p6 = scmp.ge.s32.totalorder %s954_s14, 2 }
  0x63   : > { %s1194_s26 = sld [smem:[#allocation4 + $0x3]] }
  0x64   : > { %223 = sbr.rel (%p603_p6) target bundleno = 246 (0xf6), region = 44 }
  0x69   : > { %232 = vmax.xlane.f32.xlu0 %v218_v2  ;;  %v224_v4 = vstv %s1194_s26  ;;  %v227_v5 = vstv %s1192_s25  ;;  %v230_v14 = vld [vmem:[#allocation2] sm:$0xff]  ;;  %vm238_vm1 = vcmask 7168   ;;  %v231_v17 = vld [vmem:[#allocation2 + $0x8] sm:$0xff]  ;;  %v241_v20 = vld [vmem:[#allocation3] sm:$0xff] }
  0x6a   : > { %v225_v6 = vmul.f32 %v224_v4, %v218_v2  ;;  %v226_v7 = vmul.f32 %v224_v4, %v219_v3  ;;  %v242_v23 = vld [vmem:[#allocation3 + $0x8] sm:$0xff] }
  0x6c   : > { %v228_v8 = vadd.f32 %v227_v5, %v225_v6  ;;  %v229_v9 = vadd.f32 %v227_v5, %v226_v7 }
  0x6e   : > { %v243_v10 = vmul.f32 1.442695, %v228_v8  ;;  %v245_v11 = vmul.f32 1.442695, %v229_v9 }
  0x70   : > { %790 = vpow2.f32 %v243_v10 }
  0x71   : > { %234 = vmax.xlane.f32.xlu0 %v219_v3  ;;  %792 = vpow2.f32 %v245_v11 }
  0x76   : > { %v791_v12 = vpop.eup %790 }
  0x77   : > { %247 = vadd.xlane.f32.xlu1 %v791_v12  ;;  %v793_v13 = vpop.eup %792 }
  0x7f   : > { %249 = vadd.xlane.f32.xlu1 %v793_v13 }
  0xdc   : > { %v233_v15 = vpop.xlane.xlu0 %232 }
  0xdd   : > { %v236_v16 = vmax.f32 %v230_v14, %v233_v15 }
  0xdf   : > { %239 = vst.msk [vmem:[#allocation2] sm:$0xff] %vm238_vm1, %v236_v16 }
  0xe4   : > { %v235_v18 = vpop.xlane.xlu0 %234 }
  0xe5   : > { %v237_v19 = vmax.f32 %v231_v17, %v235_v18 }
  0xe7   : > { %240 = vst.msk [vmem:[#allocation2 + $0x8] sm:$0xff] %vm238_vm1, %v237_v19 }
  0xea   : > { %v248_v21 = vpop.xlane.xlu1 %247 }
  0xeb   : > { %v251_v22 = vadd.f32 %v248_v21, %v241_v20 }
  0xed   : > { %253 = vst.msk [vmem:[#allocation3] sm:$0xff] %vm238_vm1, %v251_v22 }
  0xf2   : > { %v250_v24 = vpop.xlane.xlu1 %249 }
  0xf3   : > { %v252_v25 = vadd.f32 %v250_v24, %v242_v23 }
  0xf5   : > { %254 = vst.msk [vmem:[#allocation3 + $0x8] sm:$0xff] %vm238_vm1, %v252_v25 }
  0xf6 PF: > { %p604_p7 = scmp.ne.s32.totalorder %s954_s14, 2 }
  0xf7   : > { %s605_s9 = sshll.u32 (!%p604_p7), %s954_s14, 7  ;;  %s606_s14 = sld [smem:[#allocation4 + $0x1]] (!%p604_p7) }
  0xf8   : > { %258 = sbr.rel (%p604_p7) target bundleno = 408 (0x198), region = 48  ;;  %s1204_s27 = sld [smem:[#allocation4]] (!%p604_p7) }
  0xf9   : > { %s607_s7 = sld [smem:[#allocation4 + $0x4]] (!%p604_p7) }
  0xfd   : > { %v259_v26 = vlaneseq  ;;  %v267_v27 = vstv %s1194_s26  ;;  %v270_v28 = vstv %s1192_s25  ;;  %v262_v29 = vstv %s605_s9  ;;  %v275_v44 = vld [vmem:[#allocation2] sm:$0xff]  ;;  %v276_v47 = vld [vmem:[#allocation2 + $0x8] sm:$0xff]  ;;  %v286_v48 = vld [vmem:[#allocation3] sm:$0xff] }
  0xfe   : > { %v268_v30 = vmul.f32 %v267_v27, %v218_v2  ;;  %v269_v31 = vmul.f32 %v267_v27, %v219_v3  ;;  %vm283_vm3 = vcmask 7168   ;;  %v312_v54 = vstv %s606_s14  ;;  %v287_v59 = vld [vmem:[#allocation3 + $0x8] sm:$0xff] }
  0xff   : > { %v260_v32 = vand.u32 127, %v259_v26  ;;  %v304_v53 = vshrl.u32 %v259_v26, 7  ;;  %v315_v58 = vstv %s1204_s27  ;;  %v320_v60 = vstv %s607_s7 }
 0x100   : > { %v271_v33 = vadd.f32 %v270_v28, %v268_v30  ;;  %v272_v35 = vadd.f32 %v270_v28, %v269_v31 }
 0x101   : > { %v263_v34 = vadd.s32 %v262_v29, %v260_v32  ;;  %v306_v57 = vand.u32 1, %v304_v53  ;;  %v305_v0 = vadd.s32 8, %v304_v53 }
 0x103   : > { %vm264_vm2 = vcmp.lt.s32.totalorder %v263_v34, 300  ;;  %vm308_vm4 = vcmp.eq.s32.totalorder %v306_v57, 0  ;;  %v307_v6 = vand.u32 1, %v305_v0 }
 0x104   : > { %v265_v36 = vsel %vm264_vm2, %v218_v2, -inf  ;;  %v273_v37 = vsel %vm264_vm2, %v271_v33, -inf  ;;  %v274_v39 = vsel %vm264_vm2, %v272_v35, -inf  ;;  %v266_v41 = vsel %vm264_vm2, %v219_v3, -inf }
 0x105   : > { %277 = vmax.xlane.f32.xlu0 %v265_v36  ;;  %v288_v38 = vmul.f32 1.442695, %v273_v37  ;;  %v290_v40 = vmul.f32 1.442695, %v274_v39  ;;  %vm309_vm5 = vcmp.eq.s32.totalorder %v307_v6, 0 }
 0x107   : > { %794 = vpow2.f32 %v288_v38 }
 0x108   : > { %796 = vpow2.f32 %v290_v40 }
 0x10d   : > { %v795_v42 = vpop.eup %794  ;;  %279 = vmax.xlane.f32.xlu0 %v266_v41 }
 0x10e   : > { %292 = vadd.xlane.f32.xlu1 %v795_v42  ;;  %v797_v43 = vpop.eup %796 }
 0x116   : > { %294 = vadd.xlane.f32.xlu1 %v797_v43 }
 0x178   : > { %v278_v45 = vpop.xlane.xlu0 %277 }
 0x179   : > { %v281_v46 = vmax.f32 %v275_v44, %v278_v45 }
 0x17b   : > { %284 = vst.msk [vmem:[#allocation2] sm:$0xff] %vm283_vm3, %v281_v46 }
 0x180   : > { %v280_v49 = vpop.xlane.xlu0 %279 }
 0x181   : > { %v293_v50 = vpop.xlane.xlu1 %292  ;;  %v282_v51 = vmax.f32 %v276_v47, %v280_v49 }
 0x182   : > { %v296_v52 = vadd.f32 %v293_v50, %v286_v48  ;;  %v310_v55 = vld [vmem:[#allocation2] sm:$0xff] }
 0x183   : > { %285 = vst.msk [vmem:[#allocation2 + $0x8] sm:$0xff] %vm283_vm3, %v282_v51  ;;  %v313_v56 = vmul.f32 %v312_v54, %v310_v55 }
 0x184   : > { %298 = vst.msk [vmem:[#allocation3] sm:$0xff] %vm283_vm3, %v296_v52 }
 0x185   : > { %v316_v62 = vadd.f32 %v315_v58, %v313_v56 }
 0x189   : > { %v295_v61 = vpop.xlane.xlu1 %294 }
 0x18a   : > { %v297_v63 = vadd.f32 %v295_v61, %v287_v59  ;;  %v311_v2 = vld [vmem:[#allocation2 + $0x8] sm:$0xff] }
 0x18b   : > { %v318_v1 = vld [vmem:[#allocation3] sm:$0xff]  ;;  %v314_v5 = vmul.f32 %v312_v54, %v311_v2 }
 0x18c   : > { %v321_v3 = vsub.f32 %v320_v60, %v318_v1  ;;  %299 = vst.msk [vmem:[#allocation3 + $0x8] sm:$0xff] %vm283_vm3, %v297_v63 }
 0x18d   : > { %v317_v7 = vadd.f32 %v315_v58, %v314_v5 }
 0x18e   : > { %v323_v4 = vsel %vm308_vm4, %v316_v62, %v321_v3 }
 0x18f   : > { %325 = vst.msk [vmem:[%s1189_s5] sm:$0xff] %vm283_vm3, %v323_v4 }
 0x193   : > { %v319_v8 = vld [vmem:[#allocation3 + $0x8] sm:$0xff] }
 0x194   : > { %v322_v9 = vsub.f32 %v320_v60, %v319_v8 }
 0x196   : > { %v324_v10 = vsel %vm309_vm5, %v317_v7, %v322_v9 }
 0x197   : > { %326 = vst.msk [vmem:[%s1189_s5 + $0x8] sm:$0xff] %vm283_vm3, %v324_v10 }
 0x198 PF: > { %333 = sbr.rel (!%p1114_p12) target bundleno = 452 (0x1c4), region = 52  ;;  %s609_s22 = sshll.u32 (%p1114_p12), %s958_s15, 1 }
 0x199   : > { %s625_s21 = sshll.u32 (%p1114_p12), %s958_s15, 4  ;;  %s335_s19 = ssub.s32 (%p1114_p12), 3, %s609_s22 }
 0x19a   : > { %s1221_s28 = scalar_lea.vmem (%p1114_p12), %s1277_s2, %s625_s21   ;;  %p336_p5 = scmp.lt.s32.totalorder (%p1114_p12), %s335_s19, 2 }
 0x19d   : > { %s1313_s19 = smov (!%p336_p5, %s335_s19), 2 }
 0x19e   : > { %s610_s17 = sshll.u32 %s1313_s19, 3 }
 0x19f   : > { %p613_p10 = scmp.eq.s32.totalorder %s610_s17, 0 }
 0x1a0   : > { %s1227_s4 = sshrl.u32 (!%p613_p10), %s1313_s19, 1 }
 0x1a1   : > { %344 = sbr.rel (%p613_p10) target bundleno = 452 (0x1c4), region = 56  ;;  %p614_p12 = scmp.le.s32.totalorder (!%p613_p10), %s1227_s4, 0 }
 0x1a6   : > { %516 = sbr.rel (%p614_p12) target bundleno = 435 (0x1b3), region = 139  ;;  %s972_s15 = smov (!%p614_p12), %s1221_s28  }
 0x1a7   : > { %s976_s8 = smov (!%p614_p12), %s1189_s5   ;;  %s980_s3 = smov (!%p614_p12), 0  }
 0x1a8   : > { %s984_s11 = smov (!%p614_p12), 0  }
 0x1ab LB: >> { %v409_v11 = vld [vmem:[%s978_s8] sm:$0xff]  ;;  %v411_v12 = vld [vmem:[%s978_s8 + $0x8] sm:$0xff]  ;;  %s413_s29 = sadd.s32 1, %s982_s3  ;;  %s403_s11 = sadd.s32 1, %s986_s11   ;;  %s986_s11 = sphi %s984_s11, %s403_s11   ;;  %s982_s3 = sphi %s980_s3, %s981_s3   ;;  %s978_s8 = sphi %s976_s8, %s418_s8   ;;  %s974_s15 = sphi %s972_s15, %s419_s15  }
 0x1ac   : >> { %410 = vst [vmem:[%s974_s15] sm:$0xff] %v409_v11  ;;  %p414_p11 = scmp.ge.s32.totalorder %s413_s29, %s1227_s4  ;;  %p402_p13 = scmp.ge.s32.totalorder %s403_s11, %s1227_s4 }
 0x1ad   : >> { %412 = vst [vmem:[%s974_s15 + $0x8] sm:$0xff] %v411_v12 }
 0x1ae   : >> { %s1315_s29 = smov (%p414_p11, %s413_s29), 0  ;;  %405 = sbr.rel (!%p402_p13) target bundleno = 427 (0x1ab), region = 145 }
 0x1af   : >> { %s615_s24 = sshll.u32 %s1315_s29, 4  ;;  %s981_s3 = smov %s1315_s29  }
 0x1b0   : >> { %s418_s8 = scalar_lea.vmem %s1189_s5, %s615_s24 [#allocation8]   ;;  %s419_s15 = scalar_lea.vmem %s1221_s28, %s615_s24  }
 0x1b3 PF: > { %s1237_s0 = sand.u32 1, %s1313_s19   ;;  %s626_s20 = sshll.u32 %s1227_s4, 4 }
 0x1b4   : > { %s424_s25 = scalar_lea.vmem %s1189_s5, %s626_s20 [#allocation8]   ;;  %s426_s26 = scalar_lea.vmem %s1221_s28, %s626_s20  }
 0x1b5   : > { %p620_p0 = scmp.le.s32.totalorder %s1237_s0, 0 }
 0x1b6   : > { %s988_s9 = smov (!%p620_p0), %s426_s26   ;;  %s992_s14 = smov (!%p620_p0), %s424_s25  }
 0x1b7   : > { %530 = sbr.rel (%p620_p0) target bundleno = 452 (0x1c4), region = 150  ;;  %s996_s27 = smov (!%p620_p0), 0  }
 0x1b8   : > { %s1000_s7 = smov (!%p620_p0), 0  }
 0x1bc LB: >> { %v436_v13 = vld [vmem:[%s994_s14] sm:$0xff]  ;;  %s438_s22 = sadd.s32 1, %s998_s27  ;;  %s430_s7 = sadd.s32 1, %s1002_s7   ;;  %s1002_s7 = sphi %s1000_s7, %s430_s7   ;;  %s998_s27 = sphi %s996_s27, %s997_s27   ;;  %s994_s14 = sphi %s992_s14, %s443_s14   ;;  %s990_s9 = sphi %s988_s9, %s444_s9  }
 0x1bd   : >> { %437 = vst [vmem:[%s990_s9] sm:$0xff] %v436_v13  ;;  %p439_p2 = scmp.ge.s32.totalorder %s438_s22, %s1237_s0  ;;  %p429_p3 = scmp.ge.s32.totalorder %s430_s7, %s1237_s0 }
 0x1bf   : >> { %s1317_s22 = smov (%p439_p2, %s438_s22), 0  ;;  %432 = sbr.rel (!%p429_p3) target bundleno = 444 (0x1bc), region = 156 }
 0x1c0   : >> { %s621_s5 = sshll.u32 %s1317_s22, 3  ;;  %s997_s27 = smov %s1317_s22  }
 0x1c1   : >> { %s443_s14 = scalar_lea.vmem %s424_s25, %s621_s5 [#allocation8]   ;;  %s444_s9 = scalar_lea.vmem %s426_s26, %s621_s5  }
 0x1c4 PF: > { %s16_s18 = sadd.s32 1, %s970_s18   ;;  %s1293_s21 = sld [smem:[#allocation14_spill]] }
 0x1c5   : > { %p13_p4 = scmp.ge.s32.totalorder %s16_s18, 8   ;;  %s1294_s15 = sld [smem:[#allocation11_spill]] }
 0x1c6   : > { %s1295_s19 = sld [smem:[#allocation12_spill]]  ;;  %s1297_s9 = smov %s938_s10 }
 0x1c7   : > { %s1296_s17 = sld [smem:[#allocation13_spill]]  ;;  %s1298_s10 = smov %s1109_s30 }
 0x1c8   : > { %s1299_s11 = smov %s946_s12  ;;  %s1300_s12 = smov %s950_s13 }
 0x1c9   : > { %s1302_s14 = smov %s962_s16  ;;  %15 = sbr.rel (!%p13_p4) target bundleno = 9 (0x9), region = 167 }
 0x1ca   : > { %s1301_s13 = smov %s1293_s21 }
 0x1cc   : > { %s1303_s16 = smov %s1295_s19 }
 0x1ce   :  { %460 = vsyncpa [#allocation5], 1 }
 0x1cf   :  { %462 = vsyncpa [#allocation5 + $0x1], 1 }
 0x1d0   :  { %463 = vsyncpa [#allocation6], 1 }
 0x1d1   :  { %465 = vsyncpa [#allocation6 + $0x1], 1 }

</bundles_post_ra>
